<compile_context>
chip_gen: v6e
topology: v6e:2x2x1
jax: 0.10.0
libtpu: 0.0.40
codegen_flags: <defaults>
</compile_context>

<pallas_src>
import functools

import jax
import jax.numpy as jnp
from jax.experimental import pallas as pl
from jax.experimental.pallas import tpu as pltpu

D_IN = 784        # fc1 in_features
D_HID = 128       # fc1 out_features / fc2 in_features
D_OUT = 10        # fc2 out_features (logical)
D_OUT_PAD = 128   # lane-dense padded output width


def _round_up(x, m):
    return (x + m - 1) // m * m


def mlp_kernel(x_ref, w1_ref, b1_ref, w2_ref, b2_ref, o_ref):
    # fc1: (TB, 784)bf16 @ (784, 128)bf16 -> f32 acc; bias + relu in f32.
    h = jnp.dot(x_ref[...], w1_ref[...], preferred_element_type=jnp.float32)
    h = jnp.maximum(h + b1_ref[...], 0.0)
    # fc2: (TB, 128)bf16 @ (128, 128)bf16 (zero-padded output lanes) -> f32.
    y = jnp.dot(h.astype(jnp.bfloat16), w2_ref[...],
                preferred_element_type=jnp.float32)
    o_ref[...] = (y + b2_ref[...]).astype(o_ref.dtype)


@functools.partial(jax.jit, static_argnames=("tb",))
def net_forward(x, w1, b1, w2, b2, *, tb=256):
    """x: (B, 784) f32. w1: (784,128), b1: (1,128), w2: (128,10), b2: (1,10).

    Returns (B, 10) f32 logits == relu(x @ w1 + b1) @ w2 + b2.
    """
    B = x.shape[0]

    # --- layout / dtype prep at the pallas_call boundary --------------------
    # Lane-dense second layer: zero-pad fc2 weight/bias to 128 output lanes
    # (zero pad => padded output columns are exactly 0 and get sliced off).
    w2_p = jnp.zeros((D_HID, D_OUT_PAD), jnp.float32).at[:, :D_OUT].set(w2)
    b2_p = jnp.zeros((1, D_OUT_PAD), jnp.float32).at[:, :D_OUT].set(b2)

    # bf16 activations/weights; biases stay f32, accumulation is f32.
    x_b = x.astype(jnp.bfloat16)
    w1_b = w1.astype(jnp.bfloat16)
    w2_b = w2_p.astype(jnp.bfloat16)

    # Batch tile: multiple of 16 (bf16 sublane packing), capped at `tb`.
    TB = max(16, min(tb, _round_up(B, 16)))
    Bp = _round_up(B, TB)
    if Bp != B:
        x_b = jnp.pad(x_b, ((0, Bp - B), (0, 0)))

    grid = (Bp // TB,)

    flops = 2 * Bp * D_IN * D_HID + 2 * Bp * D_HID * D_OUT_PAD
    bytes_accessed = (x_b.size * 2 + w1_b.size * 2 + w2_b.size * 2
                      + b1.size * 4 + b2_p.size * 4 + Bp * D_OUT_PAD * 4)

    out_padded = pl.pallas_call(
        mlp_kernel,
        out_shape=jax.ShapeDtypeStruct((Bp, D_OUT_PAD), jnp.float32),
        grid_spec=pltpu.PrefetchScalarGridSpec(
            num_scalar_prefetch=0,
            grid=grid,
            in_specs=[
                # batch-tiled x: DMA pipelined (double-buffered) behind compute
                pl.BlockSpec((TB, D_IN), lambda i: (i, 0)),
                # weights / biases: constant index_map -> DMA'd once, resident
                pl.BlockSpec((D_IN, D_HID), lambda i: (0, 0)),
                pl.BlockSpec((1, D_HID), lambda i: (0, 0)),
                pl.BlockSpec((D_HID, D_OUT_PAD), lambda i: (0, 0)),
                pl.BlockSpec((1, D_OUT_PAD), lambda i: (0, 0)),
            ],
            out_specs=pl.BlockSpec((TB, D_OUT_PAD), lambda i: (i, 0)),
        ),
        compiler_params=pltpu.CompilerParams(
            # batch axis is embarrassingly parallel -> both v7x TensorCores
            dimension_semantics=("parallel",),
            # tiny working set; explicit cap keeps v7x (64 MiB VMEM) safe
            vmem_limit_bytes=32 * 1024 * 1024,
        ),
        cost_estimate=pl.CostEstimate(
            flops=flops, transcendentals=0, bytes_accessed=bytes_accessed),
    )(x_b, w1_b, b1, w2_b, b2_p)

    return out_padded[:B, :D_OUT]


def init_params(key):
    """Deterministic init mimicking nn.Linear's uniform(-1/sqrt(fan_in), ...)."""
    k1, k2, k3, k4 = jax.random.split(key, 4)
    bound1 = 1.0 / jnp.sqrt(784.0)
    bound2 = 1.0 / jnp.sqrt(128.0)
    w1 = jax.random.uniform(k1, (D_IN, D_HID), jnp.float32, -bound1, bound1)
    b1 = jax.random.uniform(k2, (1, D_HID), jnp.float32, -bound1, bound1)
    w2 = jax.random.uniform(k3, (D_HID, D_OUT), jnp.float32, -bound2, bound2)
    b2 = jax.random.uniform(k4, (1, D_OUT), jnp.float32, -bound2, bound2)
    return w1, b1, w2, b2


if __name__ == "__main__":
    key = jax.random.PRNGKey(0)
    kx, kp = jax.random.split(key)

    B = 8  # small batch; the kernel itself scales to arbitrary B via the grid
    x = jax.random.normal(kx, (B, D_IN), jnp.float32)
    w1, b1, w2, b2 = init_params(kp)

    out = net_forward(x, w1, b1, w2, b2)
    jax.block_until_ready(out)

    # Pure-JAX f32 reference; tolerance loosened for bf16 inputs (f32 accum).
    ref = jnp.maximum(x @ w1 + b1, 0.0) @ w2 + b2
    assert out.shape == (B, D_OUT)
    assert jnp.allclose(out, ref, atol=3e-2, rtol=3e-2), (
        float(jnp.max(jnp.abs(out - ref))))

    print("KERNEL_OK")
</pallas_src>

<mosaic_0001>
module attributes {stable_mosaic.version = 11 : i64} {
  func.func @mlp_kernel(%arg0: i32, %arg1: memref<16x784xbf16, #tpu.memory_space<vmem>>, %arg2: memref<784x128xbf16, #tpu.memory_space<vmem>>, %arg3: memref<1x128xf32, #tpu.memory_space<vmem>>, %arg4: memref<128x128xbf16, #tpu.memory_space<vmem>>, %arg5: memref<1x128xf32, #tpu.memory_space<vmem>>, %arg6: memref<16x128xf32, #tpu.memory_space<vmem>>) attributes {dimension_semantics = [#tpu.dimension_semantics<parallel>], iteration_bounds = array<i64: 1>, scalar_prefetch = 0 : i64, scratch_operands = 0 : i64, tpu.core_type = #tpu.core_type<tc>, window_params = [{transform_indices = @transform_0, window_bounds = array<i64: 16, 784>}, {pipeline_mode = #tpu.pipeline_mode<synchronous>, transform_indices = @transform_1, window_bounds = array<i64: 784, 128>}, {pipeline_mode = #tpu.pipeline_mode<synchronous>, transform_indices = @transform_2, window_bounds = array<i64: 1, 128>}, {pipeline_mode = #tpu.pipeline_mode<synchronous>, transform_indices = @transform_3, window_bounds = array<i64: 128, 128>}, {pipeline_mode = #tpu.pipeline_mode<synchronous>, transform_indices = @transform_4, window_bounds = array<i64: 1, 128>}, {transform_indices = @transform_5, window_bounds = array<i64: 16, 128>}]} {
    %c0 = arith.constant 0 : index
    %c0_0 = arith.constant 0 : index
    %0 = vector.load %arg1[%c0, %c0_0] : memref<16x784xbf16, #tpu.memory_space<vmem>>, vector<16x784xbf16>
    %c0_1 = arith.constant 0 : index
    %c0_2 = arith.constant 0 : index
    %1 = vector.load %arg2[%c0_1, %c0_2] : memref<784x128xbf16, #tpu.memory_space<vmem>>, vector<784x128xbf16>
    %cst = arith.constant dense<0.000000e+00> : vector<16x128xf32>
    %2 = tpu.matmul %0, %1, %cst {dimension_numbers = #tpu.dot_dimension_numbers<[1], [0], [0], [1], [0, 0, 1, 1], [], []>} : vector<16x784xbf16>, vector<784x128xbf16>, vector<16x128xf32> -> vector<16x128xf32>
    %c0_3 = arith.constant 0 : index
    %c0_4 = arith.constant 0 : index
    %3 = vector.load %arg3[%c0_3, %c0_4] : memref<1x128xf32, #tpu.memory_space<vmem>>, vector<1x128xf32>
    %4 = vector.broadcast %3 : vector<1x128xf32> to vector<16x128xf32>
    %5 = arith.addf %2, %4 : vector<16x128xf32>
    %cst_5 = arith.constant 0.000000e+00 : f32
    %6 = vector.broadcast %cst_5 : f32 to vector<16x128xf32>
    %7 = arith.maximumf %5, %6 : vector<16x128xf32>
    %8 = arith.truncf %7 : vector<16x128xf32> to vector<16x128xbf16>
    %c0_6 = arith.constant 0 : index
    %c0_7 = arith.constant 0 : index
    %9 = vector.load %arg4[%c0_6, %c0_7] : memref<128x128xbf16, #tpu.memory_space<vmem>>, vector<128x128xbf16>
    %cst_8 = arith.constant dense<0.000000e+00> : vector<16x128xf32>
    %10 = tpu.matmul %8, %9, %cst_8 {dimension_numbers = #tpu.dot_dimension_numbers<[1], [0], [0], [1], [0, 0, 1, 1], [], []>} : vector<16x128xbf16>, vector<128x128xbf16>, vector<16x128xf32> -> vector<16x128xf32>
    %c0_9 = arith.constant 0 : index
    %c0_10 = arith.constant 0 : index
    %11 = vector.load %arg5[%c0_9, %c0_10] : memref<1x128xf32, #tpu.memory_space<vmem>>, vector<1x128xf32>
    %12 = vector.broadcast %11 : vector<1x128xf32> to vector<16x128xf32>
    %13 = arith.addf %10, %12 : vector<16x128xf32>
    %c0_11 = arith.constant 0 : index
    %c0_12 = arith.constant 0 : index
    %14 = vector.load %arg6[%c0_11, %c0_12] : memref<16x128xf32, #tpu.memory_space<vmem>>, vector<16x128xf32>
    tpu.vector_store %arg6[%c0_11, %c0_12], %13 {strides = array<i32>} : memref<16x128xf32, #tpu.memory_space<vmem>>, vector<16x128xf32>,
    return
  }
  func.func @transform_0(%arg0: i32) -> (i32, i32) {
    %c0_i32 = arith.constant 0 : i32
    %c0_i32_0 = arith.constant 0 : i32
    return %arg0, %c0_i32 : i32, i32
  }
  func.func @transform_1(%arg0: i32) -> (i32, i32) {
    %c0_i32 = arith.constant 0 : i32
    %c0_i32_0 = arith.constant 0 : i32
    %c0_i32_1 = arith.constant 0 : i32
    return %c0_i32, %c0_i32_0 : i32, i32
  }
  func.func @transform_2(%arg0: i32) -> (i32, i32) {
    %c0_i32 = arith.constant 0 : i32
    %c0_i32_0 = arith.constant 0 : i32
    %c0_i32_1 = arith.constant 0 : i32
    return %c0_i32, %c0_i32_0 : i32, i32
  }
  func.func @transform_3(%arg0: i32) -> (i32, i32) {
    %c0_i32 = arith.constant 0 : i32
    %c0_i32_0 = arith.constant 0 : i32
    %c0_i32_1 = arith.constant 0 : i32
    return %c0_i32, %c0_i32_0 : i32, i32
  }
  func.func @transform_4(%arg0: i32) -> (i32, i32) {
    %c0_i32 = arith.constant 0 : i32
    %c0_i32_0 = arith.constant 0 : i32
    %c0_i32_1 = arith.constant 0 : i32
    return %c0_i32, %c0_i32_0 : i32, i32
  }
  func.func @transform_5(%arg0: i32) -> (i32, i32) {
    %c0_i32 = arith.constant 0 : i32
    %c0_i32_0 = arith.constant 0 : i32
    return %arg0, %c0_i32 : i32, i32
  }
}

</mosaic_0001>

<bundles_post_ra>
// kernel: net_forward.1
= control target key start
LH: loop header
LB: loop body
LE: loop exit
PB: predicated region body
PF: predicated region fallthrough
CT: control target
= control target key end

     0   :  { %v991_v38 = vmov 0.0   ;;  %vm992_vm0 = vmmov 0   ;;  %vm463_vm1 = vcmask 130048   ;;  %s1240_s1 = inlined_call_operand.vmem [shape: bf16[784,128], index: 1, kind: input, shape index: {}]   ;;  %s1241_s0 = inlined_call_operand.vmem [shape: bf16[16,784], index: 0, kind: input, shape index: {}]   ;;  %s1242_s3 = inlined_call_operand.vmem [shape: bf16[128,128], index: 3, kind: input, shape index: {}]   ;;  %s1243_s2 = inlined_call_operand.vmem [shape: f32[1,128], index: 2, kind: input, shape index: {}]   ;;  %s1244_s4 = inlined_call_operand.vmem [shape: f32[1,128], index: 4, kind: input, shape index: {}]   ;;  %s1245_s5 = inlined_call_operand.vmem [shape: f32[16,128], index: 5, kind: output, shape index: {}]  }
   0x1   :  { %v924_v0 = vld [vmem:[%s1240_s1 + $0x78] sm:$0xff]   ;;  %v928_v4 = vld [vmem:[%s1240_s1 + $0x70] sm:$0xff]   ;;  %v932_v8 = vld [vmem:[%s1240_s1 + $0x68] sm:$0xff]  }
   0x2   :  { %v925_v1 = vld [vmem:[%s1240_s1 + $0x38] sm:$0xff]   ;;  %819 = vmatprep.subr.bf16.mxu0 %v924_v0  ;;  %v929_v5 = vld [vmem:[%s1240_s1 + $0x30] sm:$0xff]   ;;  %v933_v9 = vld [vmem:[%s1240_s1 + $0x28] sm:$0xff]  }
   0x3   :  { %v926_v2 = vld [vmem:[%s1240_s1 + $0xf8] sm:$0xff]   ;;  %820 = vmatpush3.bf16.msra.mxu0 %v925_v1  ;;  %v930_v6 = vld [vmem:[%s1240_s1 + $0xf0] sm:$0xff]   ;;  %v934_v10 = vld [vmem:[%s1240_s1 + $0xe8] sm:$0xff]  }
   0x4   :  { %v927_v3 = vld [vmem:[%s1240_s1 + $0xb8] sm:$0xff]   ;;  %841 = vmatprep.subr.bf16.mxu1 %v926_v2  ;;  %821 = vmatprep.subr.bf16.mxu0 %v928_v4  ;;  %v931_v7 = vld [vmem:[%s1240_s1 + $0xb0] sm:$0xff]   ;;  %v935_v11 = vld [vmem:[%s1240_s1 + $0xa8] sm:$0xff]  }
   0x5   :  { %842 = vmatpush3.bf16.msra.mxu1 %v927_v3  ;;  %v936_v12 = vld [vmem:[%s1240_s1 + $0x60] sm:$0xff]   ;;  %v940_v16 = vld [vmem:[%s1240_s1 + $0x58] sm:$0xff]   ;;  %v944_v20 = vld [vmem:[%s1240_s1 + $0x50] sm:$0xff]  }
   0x6   :  { %843 = vmatprep.subr.bf16.mxu1 %v930_v6  ;;  %v937_v13 = vld [vmem:[%s1240_s1 + $0x20] sm:$0xff]   ;;  %v941_v17 = vld [vmem:[%s1240_s1 + $0x18] sm:$0xff]   ;;  %v945_v21 = vld [vmem:[%s1240_s1 + $0x10] sm:$0xff]  }
   0x7   :  { %822 = vmatpush3.bf16.msra.mxu0 %v929_v5  ;;  %v938_v14 = vld [vmem:[%s1240_s1 + $0xe0] sm:$0xff]   ;;  %v942_v18 = vld [vmem:[%s1240_s1 + $0xd8] sm:$0xff]   ;;  %v946_v22 = vld [vmem:[%s1240_s1 + $0xd0] sm:$0xff]  }
   0x8   :  { %823 = vmatprep.subr.bf16.mxu0 %v932_v8  ;;  %v939_v15 = vld [vmem:[%s1240_s1 + $0xa0] sm:$0xff]   ;;  %v943_v19 = vld [vmem:[%s1240_s1 + $0x98] sm:$0xff]   ;;  %v947_v23 = vld [vmem:[%s1240_s1 + $0x90] sm:$0xff]  }
   0x9   :  { %844 = vmatpush3.bf16.msra.mxu1 %v931_v7  ;;  %v948_v24 = vld [vmem:[%s1240_s1 + $0x48] sm:$0xff]   ;;  %v952_v28 = vld [vmem:[%s1240_s1 + $0x40] sm:$0xff]   ;;  %v959_v34 = vld [vmem:[%s1240_s1 + $0x178] sm:$0xff]  }
   0xa   :  { %845 = vmatprep.subr.bf16.mxu1 %v934_v10  ;;  %v949_v25 = vld [vmem:[%s1240_s1 + $0x8] sm:$0xff]   ;;  %v953_v29 = vld [vmem:[%s1240_s1] sm:$0xff]   ;;  %v963_v37 = vld [vmem:[%s1240_s1 + $0x138] sm:$0xff]  }
   0xb   :  { %824 = vmatpush3.bf16.msra.mxu0 %v933_v9  ;;  %v950_v26 = vld [vmem:[%s1240_s1 + $0xc8] sm:$0xff]   ;;  %v954_v30 = vld [vmem:[%s1240_s1 + $0xc0] sm:$0xff]   ;;  %v964_v39 = vld [vmem:[%s1240_s1 + $0x170] sm:$0xff]  }
   0xc   :  { %825 = vmatprep.subr.bf16.mxu0 %v936_v12  ;;  %v951_v27 = vld [vmem:[%s1240_s1 + $0x88] sm:$0xff]   ;;  %v955_v31 = vld [vmem:[%s1241_s0] ss:$28 sps:$4 sm:$0xff]   ;;  %v965_v40 = vld [vmem:[%s1240_s1 + $0x130] sm:$0xff]  }
   0xd   :  { %846 = vmatpush3.bf16.msra.mxu1 %v935_v11  ;;  %v957_v32 = vld [vmem:[%s1241_s0 + $0x4] ss:$28 sps:$4 sm:$0xff]   ;;  %v962_v36 = vld [vmem:[%s1241_s0 + $0xc] ss:$28 sps:$4 sm:$0xff]   ;;  %v970_v45 = vld [vmem:[%s1240_s1 + $0x158] sm:$0xff]  }
   0xe   :  { %847 = vmatprep.subr.bf16.mxu1 %v938_v14  ;;  %v958_v33 = vld [vmem:[%s1240_s1 + $0x80] sm:$0xff]   ;;  %499 = vmatprep.mubr.bf16.mxu0 %v957_v32  ;;  %v966_v41 = vld [vmem:[%s1240_s1 + $0x168] sm:$0xff]   ;;  %v971_v46 = vld [vmem:[%s1240_s1 + $0x118] sm:$0xff]  }
   0xf   :  { %826 = vmatpush3.bf16.msra.mxu0 %v937_v13  ;;  %v960_v35 = vld [vmem:[%s1241_s0 + $0x8] ss:$28 sps:$4 sm:$0xff]   ;;  %540 = vmatprep.mubr.bf16.mxu1 %v962_v36  ;;  %v972_v47 = vld [vmem:[%s1240_s1 + $0x150] sm:$0xff]   ;;  %v983_v57 = vld [vmem:[%s1242_s3 + $0x38] sm:$0xff]  }
  0x10   :  { %827 = vmatprep.subr.bf16.mxu0 %v940_v16  ;;  %v967_v42 = vld [vmem:[%s1240_s1 + $0x128] sm:$0xff]   ;;  %v968_v43 = vld [vmem:[%s1240_s1 + $0x160] sm:$0xff]   ;;  %v981_v49 = vld [vmem:[%s1241_s0 + $0x14] ss:$28 sps:$4 sm:$0xff]  }
  0x11   :  { %848 = vmatpush3.bf16.msra.mxu1 %v939_v15  ;;  %v969_v44 = vld [vmem:[%s1240_s1 + $0x120] sm:$0xff]   ;;  %v982_v50 = vld [vmem:[%s1241_s0 + $0x18] ss:$28 sps:$4 sm:$0xff]   ;;  %v974_v52 = vld [vmem:[%s1240_s1 + $0x148] sm:$0xff]  }
  0x12   :  { %849 = vmatprep.subr.bf16.mxu1 %v942_v18  ;;  %v978_v48 = vld [vmem:[%s1240_s1 + $0x180] sm:$0xff]   ;;  %v973_v51 = vld [vmem:[%s1240_s1 + $0x110] sm:$0xff]   ;;  %v975_v53 = vld [vmem:[%s1240_s1 + $0x108] sm:$0xff]  }
  0x13   :  { %828 = vmatpush3.bf16.msra.mxu0 %v941_v17  ;;  %v976_v54 = vld [vmem:[%s1240_s1 + $0x140] sm:$0xff]   ;;  %v979_v56 = vld [vmem:[%s1241_s0 + $0x10] ss:$28 sps:$4 sm:$0xff]   ;;  %v987_v61 = vld [vmem:[%s1242_s3 + $0x18] sm:$0xff]  }
  0x14   :  { %829 = vmatprep.subr.bf16.mxu0 %v944_v20  ;;  %v977_v55 = vld [vmem:[%s1240_s1 + $0x100] sm:$0xff]   ;;  %v984_v58 = vld [vmem:[%s1242_s3 + $0x30] sm:$0xff]   ;;  %v985_v59 = vld [vmem:[%s1242_s3 + $0x28] sm:$0xff]  }
  0x15   :  { %850 = vmatpush3.bf16.msra.mxu1 %v943_v19  ;;  %v986_v60 = vld [vmem:[%s1242_s3 + $0x20] sm:$0xff]   ;;  %v988_v62 = vld [vmem:[%s1242_s3 + $0x10] sm:$0xff]   ;;  %v989_v63 = vld [vmem:[%s1242_s3 + $0x8] sm:$0xff]  }
  0x16   :  { %851 = vmatprep.subr.bf16.mxu1 %v946_v22  ;;  %v990_v0 = vld [vmem:[%s1242_s3] sm:$0xff]  }
  0x17   :  { %830 = vmatpush3.bf16.msra.mxu0 %v945_v21  ;;  %v752_v13 = vld [vmem:[%s1243_s2] ss:$0 sm:$0xff] }
  0x18   :  { %831 = vmatprep.subr.bf16.mxu0 %v948_v24 }
  0x19   :  { %852 = vmatpush3.bf16.msra.mxu1 %v947_v23 }
  0x1a   :  { %853 = vmatprep.subr.bf16.mxu1 %v950_v26 }
  0x1b   :  { %832 = vmatpush3.bf16.msra.mxu0 %v949_v25 }
  0x1c   :  { %833 = vmatprep.subr.bf16.mxu0 %v952_v28 }
  0x1d   :  { %854 = vmatpush3.bf16.msra.mxu1 %v951_v27 }
  0x1e   :  { %855 = vmatprep.subr.bf16.mxu1 %v954_v30 }
  0x1f   :  { %834 = vmatpush3.bf16.msra.mxu0 %v953_v29 }
  0x20   :  { %863 = vmatprep.subr.bf16.mxu0 %v959_v34 }
  0x21   :  { %856 = vmatpush3.bf16.msra.mxu1 %v958_v33 }
  0x22   :  { %500 = vmatmul.mubr.bf16.vlgmr.msra.gmra.mxu0 %v955_v31  ;;  %896 = vmatprep.subr.bf16.mxu1 %v991_v38 }
  0x23   :  { %864 = vmatpush3.bf16.msra.mxu0 %v963_v37  ;;  %581 = vmatprep.mubr.bf16.mxu0 %v981_v49 }
  0x24   :  { %541 = vmatmul.mubr.bf16.vlgmr.msra.gmra.mxu1 %v960_v35  ;;  %865 = vmatprep.subr.bf16.mxu0 %v964_v39  ;;  %v810_v35 = vld [vmem:[%s1244_s4] ss:$0 sm:$0xff] }
  0x25   :  { %898 = vmatprep.mubr.msk.bf16.mxu1 %vm992_vm0, %v991_v38  ;;  %897 = vmatpush3.bf16.msra.mxu1 %v978_v48 }
  0x26   :  { %902 = vmatprep.subr.bf16.mxu1 %v991_v38 }
  0x27   :  { %866 = vmatpush3.bf16.msra.mxu0 %v965_v40 }
  0x28   :  { %867 = vmatprep.subr.bf16.mxu0 %v966_v41 }
  0x2b   :  { %868 = vmatpush3.bf16.msra.mxu0 %v967_v42 }
  0x2c   :  { %869 = vmatprep.subr.bf16.mxu0 %v968_v43  ;;  %899 = vmatmul.mubr.msk.bf16.vlgmr.msra.gmra.mxu1 %vm463_vm1, %v982_v50 }
  0x2d   :  { %918 = vmatprep.mubr.msk.bf16.mxu1 %vm992_vm0, %v991_v38  ;;  %903 = vmatpush3.bf16.msra.mxu1 %v983_v57 }
  0x2e   :  { %904 = vmatprep.subr.bf16.mxu1 %v991_v38 }
  0x2f   :  { %870 = vmatpush3.bf16.msra.mxu0 %v969_v44 }
  0x30   :  { %871 = vmatprep.subr.bf16.mxu0 %v970_v45 }
  0x31   :  { %905 = vmatpush3.bf16.msra.mxu1 %v984_v58 }
  0x32   :  { %906 = vmatprep.subr.bf16.mxu1 %v991_v38 }
  0x33   :  { %872 = vmatpush3.bf16.msra.mxu0 %v971_v46 }
  0x34   :  { %873 = vmatprep.subr.bf16.mxu0 %v972_v47 }
  0x35   :  { %907 = vmatpush3.bf16.msra.mxu1 %v985_v59 }
  0x36   :  { %908 = vmatprep.subr.bf16.mxu1 %v991_v38 }
  0x37   :  { %874 = vmatpush3.bf16.msra.mxu0 %v973_v51 }
  0x38   :  { %875 = vmatprep.subr.bf16.mxu0 %v974_v52 }
  0x39   :  { %909 = vmatpush3.bf16.msra.mxu1 %v986_v60 }
  0x3a   :  { %910 = vmatprep.subr.bf16.mxu1 %v991_v38 }
  0x3b   :  { %876 = vmatpush3.bf16.msra.mxu0 %v975_v53 }
  0x3c   :  { %877 = vmatprep.subr.bf16.mxu0 %v976_v54 }
  0x3d   :  { %911 = vmatpush3.bf16.msra.mxu1 %v987_v61 }
  0x3e   :  { %912 = vmatprep.subr.bf16.mxu1 %v991_v38 }
  0x3f   :  { %878 = vmatpush3.bf16.msra.mxu0 %v977_v55 }
  0x41   :  { %913 = vmatpush3.bf16.msra.mxu1 %v988_v62 }
  0x42   :  { %582 = vmatmul.mubr.bf16.vlgmr.msra.gmra.mxu0 %v979_v56  ;;  %914 = vmatprep.subr.bf16.mxu1 %v991_v38 }
  0x45   :  { %915 = vmatpush3.bf16.msra.mxu1 %v989_v63 }
  0x46   :  { %916 = vmatprep.subr.bf16.mxu1 %v991_v38 }
  0x49   :  { %917 = vmatpush3.bf16.msra.mxu1 %v990_v0 }
  0xe2   :  { %v835_v4 = vpop.f32.mrf.mxu0 }
  0xe4   :  { %v857_v1 = vpop.f32.mrf.mxu1  ;;  %v836_v7 = vpop.f32.mrf.mxu0 }
  0xe5   :  { %v837_v12 = vadd.f32 %v836_v7, %v835_v4 }
  0xe6   :  { %v858_v2 = vpop.f32.mrf.mxu1  ;;  %v838_v10 = vpop.f32.mrf.mxu0 }
  0xe7   :  { %v502_v15 = vadd.f32 %v837_v12, %v752_v13  ;;  %v859_v16 = vadd.f32 %v858_v2, %v857_v1 }
  0xe8   :  { %v860_v3 = vpop.f32.mrf.mxu1  ;;  %v839_v14 = vpop.f32.mrf.mxu0 }
  0xe9   :  { %v840_v17 = vadd.f32 %v839_v14, %v838_v10  ;;  %v543_v20 = vadd.f32 %v859_v16, %v502_v15 }
  0xea   :  { %v861_v5 = vpop.f32.mrf.mxu1 }
  0xeb   :  { %v505_v21 = vadd.f32 %v840_v17, %v752_v13  ;;  %v862_v22 = vadd.f32 %v861_v5, %v860_v3 }
  0xec   :  { %v624_v6 = vpop.f32.mrf.mxu1 }
  0xed   :  { %v546_v27 = vadd.f32 %v862_v22, %v505_v21 }
  0xee   :  { %v900_v8 = vpop.f32.mrf.mxu1 }
  0xf0   :  { %v627_v9 = vpop.f32.mrf.mxu1 }
  0xf2   :  { %v901_v11 = vpop.f32.mrf.mxu1 }
 0x102   :  { %v879_v18 = vpop.f32.mrf.mxu0 }
 0x104   :  { %v880_v19 = vpop.f32.mrf.mxu0 }
 0x105   :  { %v881_v23 = vadd.f32 %v880_v19, %v879_v18 }
 0x106   :  { %v882_v24 = vpop.f32.mrf.mxu0 }
 0x107   :  { %v584_v25 = vadd.f32 %v881_v23, %v543_v20 }
 0x108   :  { %v883_v26 = vpop.f32.mrf.mxu0 }
 0x109   :  { %v884_v28 = vadd.f32 %v883_v26, %v882_v24  ;;  %v625_v29 = vadd.f32 %v624_v6, %v584_v25 }
 0x10b   :  { %v587_v30 = vadd.f32 %v884_v28, %v546_v27  ;;  %v631_v32 = vmax.f32 %v625_v29, 0.0 }
 0x10d   :  { %v628_v31 = vadd.f32 %v627_v9, %v587_v30 }
 0x10f   :  { %v632_v33 = vmax.f32 %v628_v31, 0.0 }
 0x111   :  { %v633_v34 = vpack.c.bf16 %v632_v33, %v631_v32 }
 0x113   :  { %919 = vmatmul.mubr.bf16.vlgmr.msra.gmra.mxu1 %v633_v34 }
 0x1d3   :  { %v739_v36 = vpop.f32.mrf.mxu1 }
 0x1d4   :  { %v740_v37 = vadd.f32 %v810_v35, %v739_v36 }
 0x1d5   :  { %v920_v38 = vpop.f32.mrf.mxu1 }
 0x1d6   :  { %746 = vst [vmem:[%s1245_s5] sm:$0xff] %v740_v37 }
 0x1d7   :  { %v742_v39 = vpop.f32.mrf.mxu1 }
 0x1d8   :  { %v743_v40 = vadd.f32 %v810_v35, %v742_v39 }
 0x1d9   :  { %v921_v41 = vpop.f32.mrf.mxu1 }
 0x1da   :  { %747 = vst [vmem:[%s1245_s5 + $0x8] sm:$0xff] %v743_v40 }

</bundles_post_ra>
